<compile_context>
chip_gen: v5e
topology: v5e:2x2
jax: 0.10.0
libtpu: 0.0.40
codegen_flags: <defaults>
</compile_context>

<pallas_src>
import math
import functools

import jax
import jax.numpy as jnp
from jax import lax
from jax.experimental import pallas as pl
from jax.experimental.pallas import tpu as pltpu


# ---------------------------------------------------------------------------
# Fused kernel (one grid step == one sequence):
#   one-hot gather -> stacked QKV -> per-head attention -> fc -> log-softmax
# ---------------------------------------------------------------------------
def _fused_mha_kernel(ids_ref, proj_ref, fcw_ref, fcb_ref,    # inputs
                      out_ref, w_ref,                         # outputs
                      *, seq, vocab, k_pad, v_pad, num_heads, scale):
    # ---- embedding gather + Q/K/V projection as ONE exact one-hot matmul ----
    ids = ids_ref[0]                                                # (seq, 1) int32
    iota = lax.broadcasted_iota(jnp.int32, (seq, vocab), 1)
    onehot = jnp.where(ids == iota, 1.0, 0.0).astype(jnp.float32)   # exact 0/1 rows
    qkv = jnp.dot(onehot, proj_ref[...],
                  preferred_element_type=jnp.float32)               # (seq, H*(2k+v))

    k_base = num_heads * k_pad
    v_base = 2 * num_heads * k_pad

    z0 = jnp.zeros((1, 1), jnp.float32)   # fc logit, class 0 (vreg accumulator)
    z1 = jnp.zeros((1, 1), jnp.float32)   # fc logit, class 1

    for h in range(num_heads):  # tiny static head count -> fully unrolled
        q = qkv[:, h * k_pad:(h + 1) * k_pad]                       # (seq, k_pad)
        k = qkv[:, k_base + h * k_pad:k_base + (h + 1) * k_pad]     # (seq, k_pad)
        v = qkv[:, v_base + h * v_pad:v_base + (h + 1) * v_pad]     # (seq, v_pad)

        # scores = Q @ K^T * scale (padded columns are zero -> exact)
        s = lax.dot_general(q, k, (((1,), (1,)), ((), ())),
                            preferred_element_type=jnp.float32) * scale   # (seq, seq)
        m = jnp.max(s, axis=-1, keepdims=True)
        e = jnp.exp(s - m)
        p = e / jnp.sum(e, axis=-1, keepdims=True)                  # softmax (exact)

        # attention weights, lane-dense slab: column block h*seq..(h+1)*seq
        w_ref[0, :, h * seq:(h + 1) * seq] = p

        av = jnp.dot(p, v, preferred_element_type=jnp.float32)      # (seq, v_pad)

        # fc folded into the head loop: z[c] += sum_{s,j} av[s,j] * fc_w[c,s,h,j]
        f0 = fcw_ref[0:seq, h * v_pad:(h + 1) * v_pad]              # (seq, v_pad)
        f1 = fcw_ref[seq:2 * seq, h * v_pad:(h + 1) * v_pad]
        z0 = z0 + jnp.sum(jnp.sum(av * f0, axis=1, keepdims=True), axis=0, keepdims=True)
        z1 = z1 + jnp.sum(jnp.sum(av * f1, axis=1, keepdims=True), axis=0, keepdims=True)

    # ---- logits + log-softmax, all in vregs ---------------------------------
    lane = lax.broadcasted_iota(jnp.int32, (1, 2), 1)
    z = jnp.where(lane == 0, z0, z1) + fcb_ref[...]                 # (1, 2)
    m2 = jnp.max(z, axis=-1, keepdims=True)
    zs = z - m2
    lse = jnp.log(jnp.sum(jnp.exp(zs), axis=-1, keepdims=True))
    out_ref[0] = zs - lse


# ---------------------------------------------------------------------------
# One-time weight packing: layout work + embedding fold stay out of the kernel
# ---------------------------------------------------------------------------
def _round_up(x, m):
    return ((x + m - 1) // m) * m


def pack_params(params, seq_len):
    wq, wk, wv = params["wq"], params["wk"], params["wv"]
    H, k_size, embed = wq.shape
    v_size = wv.shape[1]
    k_pad = _round_up(k_size, 8)
    v_pad = _round_up(v_size, 8)
    hi = jax.lax.Precision.HIGHEST

    # zero-pad output dims to 8-lane multiples (exact: zero weight columns)
    wq_p = jnp.pad(wq, ((0, 0), (0, k_pad - k_size), (0, 0)))
    wk_p = jnp.pad(wk, ((0, 0), (0, k_pad - k_size), (0, 0)))
    wv_p = jnp.pad(wv, ((0, 0), (0, v_pad - v_size), (0, 0)))
    # (H, out, in) -> (in, H*out): heads along output columns, 8-lane aligned offsets
    wq_t = jnp.transpose(wq_p, (2, 0, 1)).reshape(embed, H * k_pad)
    wk_t = jnp.transpose(wk_p, (2, 0, 1)).reshape(embed, H * k_pad)
    wv_t = jnp.transpose(wv_p, (2, 0, 1)).reshape(embed, H * v_pad)
    w_all = jnp.concatenate([wq_t, wk_t, wv_t], axis=1)        # (embed, H*(2k_pad+v_pad))

    # Fold the embedding table through the projections (drops one in-kernel matmul).
    emb_proj = jnp.dot(params["emb"], w_all, precision=hi)     # (vocab, H*(2k_pad+v_pad))

    # fc weight: (2, seq*H*v) -> (2, seq, H, v) -> pad v -> (2*seq, H*v_pad)
    fc_w4 = params["fc_w"].reshape(2, seq_len, H, v_size)
    fc_w4 = jnp.pad(fc_w4, ((0, 0), (0, 0), (0, 0), (0, v_pad - v_size)))
    fc_w2 = fc_w4.reshape(2 * seq_len, H * v_pad)

    return {"emb_proj": emb_proj, "fc_w2": fc_w2, "fc_b": params["fc_b"]}


# ---------------------------------------------------------------------------
# Forward wrapper: one pallas_call, batch as a "parallel" grid axis
# ---------------------------------------------------------------------------
def multi_head_attention_forward(token_ids, packed, *, num_heads, k_size):
    emb_proj, fc_w2, fc_b = packed["emb_proj"], packed["fc_w2"], packed["fc_b"]
    batch, seq = token_ids.shape
    vocab, proj_cols = emb_proj.shape
    v_pad = fc_w2.shape[1] // num_heads
    k_pad = (proj_cols - num_heads * v_pad) // (2 * num_heads)
    scale = 1.0 / math.sqrt(k_size)          # norm factor uses the ORIGINAL k_size
    ids3 = token_ids.reshape(batch, seq, 1).astype(jnp.int32)

    kernel = functools.partial(
        _fused_mha_kernel, seq=seq, vocab=vocab, k_pad=k_pad, v_pad=v_pad,
        num_heads=num_heads, scale=scale)

    out3, w_slab = pl.pallas_call(
        kernel,
        grid=(batch,),
        in_specs=[
            pl.BlockSpec((1, seq, 1), lambda b: (b, 0, 0)),                  # token ids
            pl.BlockSpec((vocab, proj_cols), lambda b: (0, 0)),              # emb @ Wqkv
            pl.BlockSpec((2 * seq, num_heads * v_pad), lambda b: (0, 0)),    # fc weight
            pl.BlockSpec((1, 2), lambda b: (0, 0)),                          # fc bias
        ],
        out_specs=(
            pl.BlockSpec((1, 1, 2), lambda b: (b, 0, 0)),                    # log-probs
            pl.BlockSpec((1, seq, num_heads * seq), lambda b: (b, 0, 0)),    # attn weights
        ),
        out_shape=(
            jax.ShapeDtypeStruct((batch, 1, 2), jnp.float32),
            jax.ShapeDtypeStruct((batch, seq, num_heads * seq), jnp.float32),
        ),
        compiler_params=pltpu.CompilerParams(dimension_semantics=("parallel",)),
    )(ids3, emb_proj, fc_w2, fc_b)

    out = out3.reshape(batch, 2)
    weights = w_slab.reshape(batch, seq, num_heads, seq).transpose(0, 2, 1, 3)
    return out, weights


# ---------------------------------------------------------------------------
# Pure-JAX reference (same math, single sequence, high precision)
# ---------------------------------------------------------------------------
def _reference_forward(token_ids, params):
    hi = jax.lax.Precision.HIGHEST
    x = params["emb"][token_ids]                                  # (seq, embed)
    H, k_size, _ = params["wq"].shape
    scale = 1.0 / math.sqrt(k_size)
    As, Ws = [], []
    for h in range(H):
        q = jnp.dot(x, params["wq"][h].T, precision=hi)
        k = jnp.dot(x, params["wk"][h].T, precision=hi)
        v = jnp.dot(x, params["wv"][h].T, precision=hi)
        s = jnp.dot(q, k.T, precision=hi) * scale
        w = jax.nn.softmax(s, axis=-1)
        As.append(jnp.dot(w, v, precision=hi))
        Ws.append(w)
    A = jnp.concatenate(As, axis=-1)
    z = jnp.dot(A.reshape(1, -1), params["fc_w"].T, precision=hi) + params["fc_b"]
    return jax.nn.log_softmax(z, axis=-1), jnp.stack(Ws, axis=0)


if __name__ == "__main__":
    # Shapes consistent with the module's forward:
    #   input_size (vocab) = 16, embed_size = 16, k_size = 8, v_size = 4,
    #   num_heads = 2, seq_len = 8, max_length = seq_len * v_size = 32
    #   fc in_features = max_length * num_heads = 64.  Batch of 4 sequences.
    vocab, embed_size, k_size, v_size = 16, 16, 8, 4
    num_heads, seq_len = 2, 8
    max_length = seq_len * v_size                     # 32
    fc_in = max_length * num_heads                    # 64
    batch = 4

    key = jax.random.PRNGKey(0)
    k_emb, k_q, k_k, k_v, k_fw, k_fb, k_tok = jax.random.split(key, 7)

    bound_e = 1.0 / math.sqrt(embed_size)
    bound_f = 1.0 / math.sqrt(fc_in)
    params = {
        "emb": jax.random.normal(k_emb, (vocab, embed_size), jnp.float32),
        "wq": jax.random.uniform(k_q, (num_heads, k_size, embed_size), jnp.float32,
                                 -bound_e, bound_e),
        "wk": jax.random.uniform(k_k, (num_heads, k_size, embed_size), jnp.float32,
                                 -bound_e, bound_e),
        "wv": jax.random.uniform(k_v, (num_heads, v_size, embed_size), jnp.float32,
                                 -bound_e, bound_e),
        "fc_w": jax.random.uniform(k_fw, (2, fc_in), jnp.float32, -bound_f, bound_f),
        "fc_b": jax.random.uniform(k_fb, (1, 2), jnp.float32, -bound_f, bound_f),
    }
    # TODO(synk): self.Wo is defined in the PyTorch module but never used in forward(); omitted.

    token_ids = jax.random.randint(k_tok, (batch, seq_len), 0, vocab, dtype=jnp.int32)

    packed = pack_params(params, seq_len)
    fwd = jax.jit(functools.partial(multi_head_attention_forward,
                                    num_heads=num_heads, k_size=k_size))

    out, weights = fwd(token_ids, packed)
    out = jax.block_until_ready(out)
    weights = jax.block_until_ready(weights)

    assert out.shape == (batch, 2)
    assert weights.shape == (batch, num_heads, seq_len, seq_len)

    # Per-sequence sanity check against the pure-JAX reference.
    for b in range(batch):
        ref_out, ref_w = _reference_forward(token_ids[b], params)
        assert jnp.allclose(out[b:b + 1], ref_out, atol=2e-3), "output mismatch"
        assert jnp.allclose(weights[b], ref_w, atol=2e-3), "attention weights mismatch"

    print("KERNEL_OK")
</pallas_src>

<mosaic_0001>
module attributes {stable_mosaic.version = 11 : i64} {
  func.func @_fused_mha_kernel(%arg0: i32, %arg1: memref<1x8x1xi32, #tpu.memory_space<vmem>>, %arg2: memref<16x48xf32, #tpu.memory_space<vmem>>, %arg3: memref<16x16xf32, #tpu.memory_space<vmem>>, %arg4: memref<1x2xf32, #tpu.memory_space<vmem>>, %arg5: memref<1x1x2xf32, #tpu.memory_space<vmem>>, %arg6: memref<1x8x16xf32, #tpu.memory_space<vmem>>) attributes {dimension_semantics = [#tpu.dimension_semantics<parallel>], iteration_bounds = array<i64: 4>, scalar_prefetch = 0 : i64, scratch_operands = 0 : i64, tpu.core_type = #tpu.core_type<tc>, window_params = [{transform_indices = @transform_0, window_bounds = array<i64: 1, 8, 1>}, {pipeline_mode = #tpu.pipeline_mode<synchronous>, transform_indices = @transform_1, window_bounds = array<i64: 16, 48>}, {pipeline_mode = #tpu.pipeline_mode<synchronous>, transform_indices = @transform_2, window_bounds = array<i64: 16, 16>}, {pipeline_mode = #tpu.pipeline_mode<synchronous>, transform_indices = @transform_3, window_bounds = array<i64: 1, 2>}, {transform_indices = @transform_4, window_bounds = array<i64: 1, 1, 2>}, {transform_indices = @transform_5, window_bounds = array<i64: 1, 8, 16>}]} {
    %c0 = arith.constant 0 : index
    %c0_0 = arith.constant 0 : index
    %c0_1 = arith.constant 0 : index
    %0 = vector.load %arg1[%c0, %c0_0, %c0_1] : memref<1x8x1xi32, #tpu.memory_space<vmem>>, vector<1x8x1xi32>
    %1 = vector.shape_cast %0 : vector<1x8x1xi32> to vector<8x1xi32>
    %2 = tpu.iota {dimensions = array<i32: 1>} : vector<8x16xi32>
    %3 = vector.broadcast %1 : vector<8x1xi32> to vector<8x16xi32>
    %4 = arith.cmpi eq, %3, %2 : vector<8x16xi32>
    %cst = arith.constant 1.000000e+00 : f32
    %cst_2 = arith.constant 0.000000e+00 : f32
    %5 = vector.broadcast %cst : f32 to vector<8x16xf32>
    %6 = vector.broadcast %cst_2 : f32 to vector<8x16xf32>
    %7 = arith.select %4, %5, %6 : vector<8x16xi1>, vector<8x16xf32>
    %c0_3 = arith.constant 0 : index
    %c0_4 = arith.constant 0 : index
    %8 = vector.load %arg2[%c0_3, %c0_4] : memref<16x48xf32, #tpu.memory_space<vmem>>, vector<16x48xf32>
    %cst_5 = arith.constant dense<0.000000e+00> : vector<8x48xf32>
    %9 = tpu.matmul %7, %8, %cst_5 {dimension_numbers = #tpu.dot_dimension_numbers<[1], [0], [0], [1], [0, 0, 1, 1], [], []>} : vector<8x16xf32>, vector<16x48xf32>, vector<8x48xf32> -> vector<8x48xf32>
    %cst_6 = arith.constant 0.000000e+00 : f32
    %10 = vector.broadcast %cst_6 : f32 to vector<1x1xf32>
    %cst_7 = arith.constant 0.000000e+00 : f32
    %11 = vector.broadcast %cst_7 : f32 to vector<1x1xf32>
    %12 = vector.extract_strided_slice %9 {offsets = [0, 0], sizes = [8, 8], strides = [1, 1]} : vector<8x48xf32> to vector<8x8xf32>
    %13 = vector.extract_strided_slice %9 {offsets = [0, 16], sizes = [8, 8], strides = [1, 1]} : vector<8x48xf32> to vector<8x8xf32>
    %14 = vector.extract_strided_slice %9 {offsets = [0, 32], sizes = [8, 8], strides = [1, 1]} : vector<8x48xf32> to vector<8x8xf32>
    %cst_8 = arith.constant dense<0.000000e+00> : vector<8x8xf32>
    %15 = tpu.matmul %12, %13, %cst_8 {dimension_numbers = #tpu.dot_dimension_numbers<[1], [1], [0], [0], [0, 0, 1, 0], [], []>} : vector<8x8xf32>, vector<8x8xf32>, vector<8x8xf32> -> vector<8x8xf32>
    %cst_9 = arith.constant 0.353553385 : f32
    %16 = vector.broadcast %cst_9 : f32 to vector<8x8xf32>
    %17 = arith.mulf %15, %16 : vector<8x8xf32>
    %cst_10 = arith.constant dense<0xFF800000> : vector<8xf32>
    %18 = vector.multi_reduction <maximumf>, %17, %cst_10 [1] : vector<8x8xf32> to vector<8xf32>
    %19 = vector.shape_cast %18 : vector<8xf32> to vector<8x1xf32>
    %20 = vector.broadcast %19 : vector<8x1xf32> to vector<8x8xf32>
    %21 = arith.subf %17, %20 : vector<8x8xf32>
    %22 = math.exp %21 : vector<8x8xf32>
    %cst_11 = arith.constant dense<0.000000e+00> : vector<8xf32>
    %23 = vector.multi_reduction <add>, %22, %cst_11 [1] : vector<8x8xf32> to vector<8xf32>
    %24 = vector.shape_cast %23 : vector<8xf32> to vector<8x1xf32>
    %25 = vector.broadcast %24 : vector<8x1xf32> to vector<8x8xf32>
    %26 = arith.divf %22, %25 : vector<8x8xf32>
    %c0_12 = arith.constant 0 : index
    %c0_13 = arith.constant 0 : index
    %c0_14 = arith.constant 0 : index
    %27 = vector.load %arg6[%c0_12, %c0_13, %c0_14] : memref<1x8x16xf32, #tpu.memory_space<vmem>>, vector<1x8x8xf32>
    %28 = vector.shape_cast %27 : vector<1x8x8xf32> to vector<8x8xf32>
    %29 = vector.shape_cast %26 : vector<8x8xf32> to vector<1x8x8xf32>
    tpu.vector_store %arg6[%c0_12, %c0_13, %c0_14], %29 {strides = array<i32>} : memref<1x8x16xf32, #tpu.memory_space<vmem>>, vector<1x8x8xf32>,
    %cst_15 = arith.constant dense<0.000000e+00> : vector<8x8xf32>
    %30 = tpu.matmul %26, %14, %cst_15 {dimension_numbers = #tpu.dot_dimension_numbers<[1], [0], [0], [1], [0, 0, 1, 1], [], []>} : vector<8x8xf32>, vector<8x8xf32>, vector<8x8xf32> -> vector<8x8xf32>
    %c0_16 = arith.constant 0 : index
    %c0_17 = arith.constant 0 : index
    %31 = vector.load %arg3[%c0_16, %c0_17] : memref<16x16xf32, #tpu.memory_space<vmem>>, vector<8x8xf32>
    %c8 = arith.constant 8 : index
    %c0_18 = arith.constant 0 : index
    %32 = vector.load %arg3[%c8, %c0_18] : memref<16x16xf32, #tpu.memory_space<vmem>>, vector<8x8xf32>
    %33 = arith.mulf %30, %31 : vector<8x8xf32>
    %cst_19 = arith.constant dense<0.000000e+00> : vector<8xf32>
    %34 = vector.multi_reduction <add>, %33, %cst_19 [1] : vector<8x8xf32> to vector<8xf32>
    %35 = vector.shape_cast %34 : vector<8xf32> to vector<8x1xf32>
    %cst_20 = arith.constant dense<0.000000e+00> : vector<1xf32>
    %36 = vector.multi_reduction <add>, %35, %cst_20 [0] : vector<8x1xf32> to vector<1xf32>
    %37 = vector.shape_cast %36 : vector<1xf32> to vector<1x1xf32>
    %38 = arith.addf %10, %37 : vector<1x1xf32>
    %39 = arith.mulf %30, %32 : vector<8x8xf32>
    %cst_21 = arith.constant dense<0.000000e+00> : vector<8xf32>
    %40 = vector.multi_reduction <add>, %39, %cst_21 [1] : vector<8x8xf32> to vector<8xf32>
    %41 = vector.shape_cast %40 : vector<8xf32> to vector<8x1xf32>
    %cst_22 = arith.constant dense<0.000000e+00> : vector<1xf32>
    %42 = vector.multi_reduction <add>, %41, %cst_22 [0] : vector<8x1xf32> to vector<1xf32>
    %43 = vector.shape_cast %42 : vector<1xf32> to vector<1x1xf32>
    %44 = arith.addf %11, %43 : vector<1x1xf32>
    %45 = vector.extract_strided_slice %9 {offsets = [0, 8], sizes = [8, 8], strides = [1, 1]} : vector<8x48xf32> to vector<8x8xf32>
    %46 = vector.extract_strided_slice %9 {offsets = [0, 24], sizes = [8, 8], strides = [1, 1]} : vector<8x48xf32> to vector<8x8xf32>
    %47 = vector.extract_strided_slice %9 {offsets = [0, 40], sizes = [8, 8], strides = [1, 1]} : vector<8x48xf32> to vector<8x8xf32>
    %cst_23 = arith.constant dense<0.000000e+00> : vector<8x8xf32>
    %48 = tpu.matmul %45, %46, %cst_23 {dimension_numbers = #tpu.dot_dimension_numbers<[1], [1], [0], [0], [0, 0, 1, 0], [], []>} : vector<8x8xf32>, vector<8x8xf32>, vector<8x8xf32> -> vector<8x8xf32>
    %cst_24 = arith.constant 0.353553385 : f32
    %49 = vector.broadcast %cst_24 : f32 to vector<8x8xf32>
    %50 = arith.mulf %48, %49 : vector<8x8xf32>
    %cst_25 = arith.constant dense<0xFF800000> : vector<8xf32>
    %51 = vector.multi_reduction <maximumf>, %50, %cst_25 [1] : vector<8x8xf32> to vector<8xf32>
    %52 = vector.shape_cast %51 : vector<8xf32> to vector<8x1xf32>
    %53 = vector.broadcast %52 : vector<8x1xf32> to vector<8x8xf32>
    %54 = arith.subf %50, %53 : vector<8x8xf32>
    %55 = math.exp %54 : vector<8x8xf32>
    %cst_26 = arith.constant dense<0.000000e+00> : vector<8xf32>
    %56 = vector.multi_reduction <add>, %55, %cst_26 [1] : vector<8x8xf32> to vector<8xf32>
    %57 = vector.shape_cast %56 : vector<8xf32> to vector<8x1xf32>
    %58 = vector.broadcast %57 : vector<8x1xf32> to vector<8x8xf32>
    %59 = arith.divf %55, %58 : vector<8x8xf32>
    %c0_27 = arith.constant 0 : index
    %c0_28 = arith.constant 0 : index
    %c8_29 = arith.constant 8 : index
    %60 = vector.load %arg6[%c0_27, %c0_28, %c8_29] : memref<1x8x16xf32, #tpu.memory_space<vmem>>, vector<1x8x8xf32>
    %61 = vector.shape_cast %60 : vector<1x8x8xf32> to vector<8x8xf32>
    %62 = vector.shape_cast %59 : vector<8x8xf32> to vector<1x8x8xf32>
    tpu.vector_store %arg6[%c0_27, %c0_28, %c8_29], %62 {strides = array<i32>} : memref<1x8x16xf32, #tpu.memory_space<vmem>>, vector<1x8x8xf32>,
    %cst_30 = arith.constant dense<0.000000e+00> : vector<8x8xf32>
    %63 = tpu.matmul %59, %47, %cst_30 {dimension_numbers = #tpu.dot_dimension_numbers<[1], [0], [0], [1], [0, 0, 1, 1], [], []>} : vector<8x8xf32>, vector<8x8xf32>, vector<8x8xf32> -> vector<8x8xf32>
    %c0_31 = arith.constant 0 : index
    %c8_32 = arith.constant 8 : index
    %64 = vector.load %arg3[%c0_31, %c8_32] : memref<16x16xf32, #tpu.memory_space<vmem>>, vector<8x8xf32>
    %c8_33 = arith.constant 8 : index
    %c8_34 = arith.constant 8 : index
    %65 = vector.load %arg3[%c8_33, %c8_34] : memref<16x16xf32, #tpu.memory_space<vmem>>, vector<8x8xf32>
    %66 = arith.mulf %63, %64 : vector<8x8xf32>
    %cst_35 = arith.constant dense<0.000000e+00> : vector<8xf32>
    %67 = vector.multi_reduction <add>, %66, %cst_35 [1] : vector<8x8xf32> to vector<8xf32>
    %68 = vector.shape_cast %67 : vector<8xf32> to vector<8x1xf32>
    %cst_36 = arith.constant dense<0.000000e+00> : vector<1xf32>
    %69 = vector.multi_reduction <add>, %68, %cst_36 [0] : vector<8x1xf32> to vector<1xf32>
    %70 = vector.shape_cast %69 : vector<1xf32> to vector<1x1xf32>
    %71 = arith.addf %38, %70 : vector<1x1xf32>
    %72 = arith.mulf %63, %65 : vector<8x8xf32>
    %cst_37 = arith.constant dense<0.000000e+00> : vector<8xf32>
    %73 = vector.multi_reduction <add>, %72, %cst_37 [1] : vector<8x8xf32> to vector<8xf32>
    %74 = vector.shape_cast %73 : vector<8xf32> to vector<8x1xf32>
    %cst_38 = arith.constant dense<0.000000e+00> : vector<1xf32>
    %75 = vector.multi_reduction <add>, %74, %cst_38 [0] : vector<8x1xf32> to vector<1xf32>
    %76 = vector.shape_cast %75 : vector<1xf32> to vector<1x1xf32>
    %77 = arith.addf %44, %76 : vector<1x1xf32>
    %78 = tpu.iota {dimensions = array<i32: 1>} : vector<1x2xi32>
    %c0_i32 = arith.constant 0 : i32
    %79 = vector.broadcast %c0_i32 : i32 to vector<1x2xi32>
    %80 = arith.cmpi eq, %78, %79 : vector<1x2xi32>
    %81 = vector.shape_cast %71 : vector<1x1xf32> to vector<1x1xf32>
    %82 = vector.broadcast %81 : vector<1x1xf32> to vector<1x2xf32>
    %83 = vector.shape_cast %77 : vector<1x1xf32> to vector<1x1xf32>
    %84 = vector.broadcast %83 : vector<1x1xf32> to vector<1x2xf32>
    %85 = arith.select %80, %82, %84 : vector<1x2xi1>, vector<1x2xf32>
    %c0_39 = arith.constant 0 : index
    %c0_40 = arith.constant 0 : index
    %86 = vector.load %arg4[%c0_39, %c0_40] : memref<1x2xf32, #tpu.memory_space<vmem>>, vector<1x2xf32>
    %87 = arith.addf %85, %86 : vector<1x2xf32>
    %cst_41 = arith.constant dense<0xFF800000> : vector<1xf32>
    %88 = vector.multi_reduction <maximumf>, %87, %cst_41 [1] : vector<1x2xf32> to vector<1xf32>
    %89 = vector.shape_cast %88 : vector<1xf32> to vector<1x1xf32>
    %90 = vector.broadcast %89 : vector<1x1xf32> to vector<1x2xf32>
    %91 = arith.subf %87, %90 : vector<1x2xf32>
    %92 = math.exp %91 : vector<1x2xf32>
    %cst_42 = arith.constant dense<0.000000e+00> : vector<1xf32>
    %93 = vector.multi_reduction <add>, %92, %cst_42 [1] : vector<1x2xf32> to vector<1xf32>
    %94 = vector.shape_cast %93 : vector<1xf32> to vector<1x1xf32>
    %95 = math.log %94 : vector<1x1xf32>
    %96 = vector.broadcast %95 : vector<1x1xf32> to vector<1x2xf32>
    %97 = arith.subf %91, %96 : vector<1x2xf32>
    %c0_43 = arith.constant 0 : index
    %c0_44 = arith.constant 0 : index
    %c0_45 = arith.constant 0 : index
    %98 = vector.load %arg5[%c0_43, %c0_44, %c0_45] : memref<1x1x2xf32, #tpu.memory_space<vmem>>, vector<1x1x2xf32>
    %99 = vector.shape_cast %98 : vector<1x1x2xf32> to vector<1x2xf32>
    %100 = vector.shape_cast %97 : vector<1x2xf32> to vector<1x1x2xf32>
    tpu.vector_store %arg5[%c0_43, %c0_44, %c0_45], %100 {strides = array<i32>} : memref<1x1x2xf32, #tpu.memory_space<vmem>>, vector<1x1x2xf32>,
    return
  }
  func.func @transform_0(%arg0: i32) -> (i32, i32, i32) {
    %c0_i32 = arith.constant 0 : i32
    %c0_i32_0 = arith.constant 0 : i32
    %c0_i32_1 = arith.constant 0 : i32
    return %arg0, %c0_i32, %c0_i32_0 : i32, i32, i32
  }
  func.func @transform_1(%arg0: i32) -> (i32, i32) {
    %c0_i32 = arith.constant 0 : i32
    %c0_i32_0 = arith.constant 0 : i32
    %c0_i32_1 = arith.constant 0 : i32
    return %c0_i32, %c0_i32_0 : i32, i32
  }
  func.func @transform_2(%arg0: i32) -> (i32, i32) {
    %c0_i32 = arith.constant 0 : i32
    %c0_i32_0 = arith.constant 0 : i32
    %c0_i32_1 = arith.constant 0 : i32
    return %c0_i32, %c0_i32_0 : i32, i32
  }
  func.func @transform_3(%arg0: i32) -> (i32, i32) {
    %c0_i32 = arith.constant 0 : i32
    %c0_i32_0 = arith.constant 0 : i32
    %c0_i32_1 = arith.constant 0 : i32
    return %c0_i32, %c0_i32_0 : i32, i32
  }
  func.func @transform_4(%arg0: i32) -> (i32, i32, i32) {
    %c0_i32 = arith.constant 0 : i32
    %c0_i32_0 = arith.constant 0 : i32
    %c0_i32_1 = arith.constant 0 : i32
    return %arg0, %c0_i32, %c0_i32_0 : i32, i32, i32
  }
  func.func @transform_5(%arg0: i32) -> (i32, i32, i32) {
    %c0_i32 = arith.constant 0 : i32
    %c0_i32_0 = arith.constant 0 : i32
    %c0_i32_1 = arith.constant 0 : i32
    return %arg0, %c0_i32, %c0_i32_0 : i32, i32, i32
  }
}

</mosaic_0001>

<bundles_post_ra>
// kernel: multi_head_attention_forward.1
= control target key start
LH: loop header
LB: loop body
LE: loop exit
PB: predicated region body
PF: predicated region fallthrough
CT: control target
= control target key end

     0   :  { %s670_s18 = smov 0   ;;  %s742_s0 = inlined_call_operand.vmem [shape: s32[4,8,1], index: 0, kind: input, shape index: {}]   ;;  %s743_s1 = inlined_call_operand.vmem [shape: f32[16,48], index: 1, kind: input, shape index: {}]   ;;  %s744_s2 = inlined_call_operand.vmem [shape: f32[16,16], index: 2, kind: input, shape index: {}]   ;;  %s745_s3 = inlined_call_operand.vmem [shape: f32[1,2], index: 3, kind: input, shape index: {}]   ;;  %s746_s4 = inlined_call_operand.vmem [shape: f32[4,1,2], index: 4, kind: output, shape index: {0}]   ;;  %s747_s5 = inlined_call_operand.vmem [shape: f32[4,8,16], index: 5, kind: output, shape index: {1}]  }
   0x1 LB: > { %s579_s19 = sadd.s32 4294967295, %s630_s18   ;;  %p583_p0 = scmp.ge.s32.totalorder %s630_s18, 1  ;;  %s630_s18 = sphi %s670_s18, %s16_s18  }
   0x2   : > { %p189_p1 = scmp.lt.s32.totalorder %s630_s18, 5 }
   0x4   : > { %p190_p2 = pnand %p583_p0, %p189_p1 }
   0x5   : > { %p218_p3 = scmp.lt.s32.totalorder (!%p190_p2), %s579_s19, 3  ;;  %s634_s28 = smov (!%p190_p2), 104  }
   0x6   : > { %193 = sbr.rel (%p190_p2) target bundleno = 1304 (0x518), region = 36  ;;  %s635_s29 = smov (!%p190_p2), 112  }
   0x7   : > { %s636_s30 = smov (!%p190_p2), 120   ;;  %s637_s6 = smov (!%p190_p2), 96  }
   0x8   : > { %s638_s7 = smov (!%p190_p2), 88   ;;  %s639_s17 = smov (!%p190_p2), 8  }
   0xb   : > { %v238_v0 = vld [vmem:[%s743_s1 + $0x8] sm:$0xff]  ;;  %v632_v1 = vmov 0   ;;  %s749_s19 = smov (!%p218_p3, %s579_s19), 3  ;;  %v237_v3 = vld [vmem:[%s743_s1] sm:$0xff]  ;;  %v230_v4 = vlaneseq  ;;  %vm239_vm0 = vcmask 130048   ;;  %v633_v7 = vmov 0.0  }
   0xc   : > { %611 = vset.pattern.permute.xlu0 %v632_v1  ;;  %257 = vmatpush.msra.mxu0 %v238_v0  ;;  %s584_s22 = sshll.u32 %s749_s19, 3  ;;  %vm266_vm2 = vcmask 64512   ;;  %v451_v31 = vld [vmem:[%s744_s2] sm:$0xff]  ;;  %v452_v33 = vld [vmem:[%s744_s2 + $0x8] sm:$0xff]  ;;  %vm487_vm12 = vcmask 8192   ;;  %vm424_vm13 = vcmask 130112  }
   0xd   : > { %s221_s25 = scalar_lea.vmem %s742_s0, %s584_s22  ;;  %v692_v5 = vand.u32 127, %v230_v4  ;;  %s717_s14 = scalar_lea.vmem %s747_s5, %s584_s22 }
   0xe   : > { %v229_v2 = vld [vmem:[%s221_s25] sm:$0xff]  ;;  %258 = vmatpush.msra.mxu0 %v237_v3  ;;  %s224_s22 = scalar_lea.vmem %s746_s4, %s749_s19 }
   0xf   : > { %233 = vperm.xlu0 %611, %v229_v2   ;;  %vm483_vm11 = vcmp.eq.s32.totalorder %v692_v5, 0 }
  0x81   : > { %v234_v6 = vpop.permute.xlu0 %233 }
  0x82   : > { %vm235_vm1 = vcmp.eq.s32.totalorder %v234_v6, %v692_v5 }
  0x83   : > { %v236_v8 = vsel %vm235_vm1, 1.0, %v633_v7 }
  0x84   : > { %586 = vmatmul.msk.f32.vlgmr.msra.gmra.mxu0 %vm239_vm0, %v236_v8 }
 0x101   : > { %v260_v9 = vpop.f32.mrf.mxu0 }
 0x102   : > { %369 = vrot.lane.b32.xlu1 %v260_v9, %s634_s28  ;;  %264 = vrot.lane.b32.xlu0 %v260_v9, %s635_s29 }
 0x10a   : > { %367 = vrot.lane.b32.xlu1 %v260_v9, %s636_s30 }
 0x174   : > { %v370_v10 = vpop.permute.xlu1 %369  ;;  %v265_v11 = vpop.permute.xlu0 %264 }
 0x175   : > { %587 = vmatpush.xpose.msk.msra.mxu1 %vm266_vm2, %v265_v11  ;;  %590 = vmatpush.xpose.msk.msra.mxu3 %vm266_vm2, %v370_v10 }
 0x178   : > { %588 = vmatmul.msk.f32.vlgmr.msra.gmra.mxu1 %vm266_vm2, %v260_v9 }
 0x17c   : > { %v368_v12 = vpop.permute.xlu1 %367 }
 0x17d   : > { %591 = vmatmul.msk.f32.vlgmr.msra.gmra.mxu3 %vm266_vm2, %v368_v12 }
 0x1f5   : > { %v288_v13 = vpop.f32.mrf.mxu1 }
 0x1f6   : > { %v291_v14 = vmul.f32 0.35355338, %v288_v13 }
 0x1f8   : > { %v292_v15 = vsel %vm266_vm2, %v291_v14, -inf }
 0x1f9   : > { %293 = vmax.xlane.f32.xlu2 %v292_v15 }
 0x200   : > { %v392_v16 = vpop.f32.mrf.mxu3 }
 0x201   : > { %v395_v17 = vmul.f32 0.35355338, %v392_v16 }
 0x203   : > { %v396_v18 = vsel %vm266_vm2, %v395_v17, -inf }
 0x204   : > { %397 = vmax.xlane.f32.xlu2 %v396_v18 }
 0x21c   : > { %317 = vrot.lane.b32.xlu2 %v260_v9, %s637_s6 }
 0x224   : > { %426 = vrot.lane.b32.xlu2 %v260_v9, %s638_s7 }
 0x22c   : > { %454 = vrot.lane.b32.xlu2 %v451_v31, %s636_s30 }
 0x234   : > { %469 = vrot.lane.b32.xlu2 %v452_v33, %s636_s30 }
 0x26c   : > { %v294_v19 = vpop.xlane.xlu2 %293 }
 0x26d   : > { %v295_v20 = vsub.f32 %v291_v14, %v294_v19 }
 0x26f   : > { %v296_v21 = vmul.f32 1.442695, %v295_v20 }
 0x271   : > { %612 = vpow2.f32 %v296_v21 }
 0x277   : > { %v613_v22 = vpop.eup %612  ;;  %v398_v23 = vpop.xlane.xlu2 %397 }
 0x278   : > { %v399_v24 = vsub.f32 %v395_v17, %v398_v23  ;;  %v298_v25 = vsel %vm266_vm2, %v613_v22, 0.0 }
 0x279   : > { %299 = vadd.xlane.f32.xlu0 %v298_v25 }
 0x27a   : > { %v400_v26 = vmul.f32 1.442695, %v399_v24 }
 0x27c   : > { %614 = vpow2.f32 %v400_v26 }
 0x27f   : > { %v318_v27 = vpop.permute.xlu2 %317 }
 0x280   : > { %338 = vmatpush.msra.mxu2 %v318_v27 }
 0x282   : > { %v615_v28 = vpop.eup %614 }
 0x283   : > { %v402_v29 = vsel %vm266_vm2, %v615_v28, 0.0 }
 0x284   : > { %403 = vadd.xlane.f32.xlu1 %v402_v29 }
 0x287   : > { %v427_v30 = vpop.permute.xlu2 %426 }
 0x288   : > { %446 = vmatpush.msrb.mxu2 %v427_v30 }
 0x28f   : > { %v455_v57 = vpop.permute.xlu2 %454 }
 0x297   : > { %v470_v63 = vpop.permute.xlu2 %469 }
 0x2ec   : > { %v300_v32 = vpop.xlane.xlu0 %299 }
 0x2ed   : > { %616 = vrcp.f32 %v300_v32  ;;  %v312_v37 = vand.u32 2147483648, %v300_v32  ;;  %v310_v40 = vand.u32 2147483647, %v300_v32  ;;  %vm306_vm4 = vweird.f32 %v300_v32 }
 0x2ef   : > { %v313_v42 = vor.u32 1.1754944e-38, %v312_v37  ;;  %vm311_vm6 = vcmp.eq.f32.partialorder %v310_v40, 8.507059e+37 }
 0x2f3   : > { %v617_v34 = vpop.eup %616 }
 0x2f4   : > { %v302_v35 = vmul.f32 %v617_v34, %v300_v32  ;;  %vm307_vm3 = vweird.f32 %v617_v34 }
 0x2f5   : > { %vm308_vm5 = vmor %vm306_vm4, %vm307_vm3 }
 0x2f6   : > { %v303_v36 = vsub.f32 1.0, %v302_v35 }
 0x2f7   : > { %v404_v38 = vpop.xlane.xlu1 %403 }
 0x2f8   : > { %v304_v39 = vmul.f32 %v617_v34, %v303_v36  ;;  %618 = vrcp.f32 %v404_v38  ;;  %v416_v49 = vand.u32 2147483648, %v404_v38  ;;  %v414_v51 = vand.u32 2147483647, %v404_v38  ;;  %v485_v36 = vld [vmem:[%s745_s3] sm:$0x1] }
 0x2f9   : > { %vm410_vm8 = vweird.f32 %v404_v38 }
 0x2fa   : > { %v305_v41 = vadd.f32 %v617_v34, %v304_v39  ;;  %v417_v53 = vor.u32 1.1754944e-38, %v416_v49  ;;  %vm415_vm10 = vcmp.eq.f32.partialorder %v414_v51, 8.507059e+37 }
 0x2fc   : > { %v309_v43 = vsel %vm308_vm5, %v617_v34, %v305_v41 }
 0x2fd   : > { %v314_v44 = vsel %vm311_vm6, %v313_v42, %v309_v43 }
 0x2fe   : > { %v619_v45 = vpop.eup %618  ;;  %v315_v46 = vmul.f32 %v613_v22, %v314_v44 }
 0x2ff   : > { %v406_v47 = vmul.f32 %v619_v45, %v404_v38  ;;  %vm411_vm7 = vweird.f32 %v619_v45 }
 0x300   : > { %589 = vmatmul.msk.f32.vlgmr.msra.gmra.mxu2 %vm266_vm2, %v315_v46  ;;  %316 = vst.msk [vmem:[%s717_s14] sm:$0xff] %vm266_vm2, %v315_v46  ;;  %vm412_vm9 = vmor %vm410_vm8, %vm411_vm7 }
 0x301   : > { %v407_v48 = vsub.f32 1.0, %v406_v47 }
 0x303   : > { %v408_v50 = vmul.f32 %v619_v45, %v407_v48 }
 0x305   : > { %v409_v52 = vadd.f32 %v619_v45, %v408_v50 }
 0x307   : > { %v413_v54 = vsel %vm412_vm9, %v619_v45, %v409_v52 }
 0x308   : > { %v418_v55 = vsel %vm415_vm10, %v417_v53, %v413_v54 }
 0x309   : > { %v419_v56 = vmul.f32 %v615_v28, %v418_v55 }
 0x30b   : > { %592 = vmatmul.msk.f32.vlgmr.msrb.gmra.mxu2 %vm266_vm2, %v419_v56 }
 0x383   : > { %v340_v58 = vpop.f32.mrf.mxu2 }
 0x384   : > { %v345_v59 = vmul.f32 %v451_v31, %v340_v58  ;;  %v356_v60 = vmul.f32 %v452_v33, %v340_v58 }
 0x386   : > { %v357_v61 = vsel %vm266_vm2, %v356_v60, 0.0  ;;  %v346_v62 = vsel %vm266_vm2, %v345_v59, 0.0 }
 0x387   : > { %358 = vadd.xlane.f32.xlu1 %v357_v61  ;;  %347 = vadd.xlane.f32.xlu0 %v346_v62 }
 0x38e   : > { %v448_v0 = vpop.f32.mrf.mxu2 }
 0x38f   : > { %v457_v1 = vmul.f32 %v455_v57, %v448_v0  ;;  %v472_v2 = vmul.f32 %v470_v63, %v448_v0 }
 0x391   : > { %v458_v3 = vsel %vm266_vm2, %v457_v1, 0.0  ;;  %v473_v4 = vsel %vm266_vm2, %v472_v2, 0.0 }
 0x392   : > { %459 = vadd.xlane.f32.xlu2 %v458_v3  ;;  %474 = vadd.xlane.f32.xlu0 %v473_v4 }
 0x3fa   : > { %v359_v6 = vpop.xlane.xlu1 %358  ;;  %v348_v7 = vpop.xlane.xlu0 %347 }
 0x3fb   : > { %v360_v8 = vrot.slane %v359_v6, 4  ;;  %v349_v9 = vrot.slane %v348_v7, 4 }
 0x3fd   : > { %v361_v10 = vadd.f32 %v360_v8, %v359_v6  ;;  %v350_v11 = vadd.f32 %v349_v9, %v348_v7 }
 0x3ff   : > { %v362_v12 = vrot.slane %v361_v10, 2  ;;  %v351_v13 = vrot.slane %v350_v11, 2 }
 0x401   : > { %v363_v18 = vadd.f32 %v362_v12, %v361_v10  ;;  %v352_v19 = vadd.f32 %v351_v13, %v350_v11 }
 0x403   : > { %v364_v24 = vrot.slane %v363_v18, 1  ;;  %v353_v25 = vrot.slane %v352_v19, 1 }
 0x405   : > { %v475_v14 = vpop.xlane.xlu0 %474  ;;  %v460_v15 = vpop.xlane.xlu2 %459  ;;  %v365_v30 = vadd.f32 %v364_v24, %v363_v18  ;;  %v354_v31 = vadd.f32 %v353_v25, %v352_v19 }
 0x406   : > { %v476_v16 = vrot.slane %v475_v14, 4  ;;  %v461_v17 = vrot.slane %v460_v15, 4 }
 0x408   : > { %v477_v20 = vadd.f32 %v476_v16, %v475_v14  ;;  %v462_v21 = vadd.f32 %v461_v17, %v460_v15 }
 0x40a   : > { %v478_v22 = vrot.slane %v477_v20, 2  ;;  %v463_v23 = vrot.slane %v462_v21, 2 }
 0x40c   : > { %v479_v26 = vadd.f32 %v478_v22, %v477_v20  ;;  %v464_v27 = vadd.f32 %v463_v23, %v462_v21 }
 0x40e   : > { %v480_v28 = vrot.slane %v479_v26, 1  ;;  %v465_v29 = vrot.slane %v464_v27, 1 }
 0x410   : > { %v481_v32 = vadd.f32 %v480_v28, %v479_v26  ;;  %v466_v33 = vadd.f32 %v465_v29, %v464_v27 }
 0x412   : > { %v482_v34 = vadd.f32 %v481_v32, %v365_v30  ;;  %v467_v35 = vadd.f32 %v466_v33, %v354_v31 }
 0x414   : > { %v484_v37 = vsel %vm483_vm11, %v467_v35, %v482_v34 }
 0x415   : > { %v486_v38 = vadd.f32 %v485_v36, %v484_v37 }
 0x417   : > { %v488_v39 = vsel %vm487_vm12, %v486_v38, -inf }
 0x418   : > { %489 = vmax.xlane.f32.xlu1 %v488_v39 }
 0x431   : > { %421 = vrot.lane.b32.xlu1 %v419_v56, %s639_s17 }
 0x48b   : > { %v490_v40 = vpop.xlane.xlu1 %489 }
 0x48c   : > { %v491_v41 = vsub.f32 %v486_v38, %v490_v40 }
 0x48e   : > { %v492_v42 = vmul.f32 1.442695, %v491_v41 }
 0x490   : > { %620 = vpow2.f32 %v492_v42 }
 0x496   : > { %v621_v5 = vpop.eup %620 }
 0x497   : > { %v494_v43 = vsel %vm487_vm12, %v621_v5, 0.0 }
 0x498   : > { %495 = vadd.xlane.f32.xlu0 %v494_v43 }
 0x4a3   : > { %v422_v44 = vpop.permute.xlu1 %421 }
 0x4a4   : > { %425 = vst.msk [vmem:[%s717_s14] sm:$0xff] %vm424_vm13, %v422_v44 }
 0x50b   : > { %v496_v45 = vpop.xlane.xlu0 %495 }
 0x50c   : > { %622 = vlog2.f32 %v496_v45 }
 0x512   : > { %v623_v46 = vpop.eup %622 }
 0x513   : > { %v498_v47 = vmul.f32 0.6931472, %v623_v46 }
 0x515   : > { %v499_v48 = vsub.f32 %v491_v41, %v498_v47 }
 0x517   : > { %500 = vst.msk [vmem:[%s224_s22] sm:$0x1] %vm487_vm12, %v499_v48 }
 0x518 PF: > { %s16_s18 = sadd.s32 1, %s630_s18  }
 0x519   : > { %p13_p4 = scmp.ge.s32.totalorder %s16_s18, 6  }
 0x51b   :  { %15 = sbr.rel (!%p13_p4) target bundleno = 1 (0x1), region = 78 }

</bundles_post_ra>
